<compile_context>
chip_gen: v7x
topology: tpu7x:2x2x1
jax: 0.10.0
libtpu: 0.0.40
codegen_flags: <defaults>
</compile_context>

<pallas_src>
import functools

import jax
import jax.numpy as jnp
from jax.experimental import pallas as pl
from jax.experimental.pallas import tpu as pltpu

LANE = 128


def _round_up(x, m):
    return ((x + m - 1) // m) * m


def _masked_layernorm(x, gamma, beta, d_valid, eps=1e-5):
    """LayerNorm over the first `d_valid` lanes of a zero-padded [*, Dp] tensor.

    Padded lanes of x are 0 and gamma/beta are zero-padded, so sums over the full
    lane width equal sums over the valid features and padded lanes stay exactly 0.
    """
    inv_d = 1.0 / float(d_valid)
    mu = jnp.sum(x, axis=-1, keepdims=True) * inv_d
    ex2 = jnp.sum(x * x, axis=-1, keepdims=True) * inv_d
    var = ex2 - mu * mu
    return (x - mu) * jax.lax.rsqrt(var + eps) * gamma + beta


def gcn_block_kernel(a_ref, x_ref,
                     w1_ref, b1_ref, g1_ref, bt1_ref,
                     w2_ref, b2_ref, g2_ref, bt2_ref,
                     ws_ref, bs_ref, we_ref, be_ref,
                     o_ref, *, d_valid):
    a = a_ref[...]                        # [N, N]   bf16 normalized adjacency
    x = x_ref[...]                        # [N, Dp]  f32, zero-padded features
    skip = x
    x_bf = x.astype(jnp.bfloat16)

    # GCNConv1: A_hat @ (X @ W1) + b1   (bf16 MXU operands, f32 accumulation)
    h = jnp.dot(x_bf, w1_ref[...], preferred_element_type=jnp.float32)
    h = jnp.dot(a, h.astype(jnp.bfloat16), preferred_element_type=jnp.float32)
    h = h + b1_ref[...]
    # norm1 + ReLU (f32)
    h = jnp.maximum(_masked_layernorm(h, g1_ref[...], bt1_ref[...], d_valid), 0.0)

    # GCNConv2: A_hat @ (H @ W2) + b2
    h2 = jnp.dot(h.astype(jnp.bfloat16), w2_ref[...],
                 preferred_element_type=jnp.float32)
    h2 = jnp.dot(a, h2.astype(jnp.bfloat16), preferred_element_type=jnp.float32)
    h2 = h2 + b2_ref[...]
    # norm2 (f32)
    h2 = _masked_layernorm(h2, g2_ref[...], bt2_ref[...], d_valid)

    # SE: h2 * sigmoid(W_e relu(W_s h2 + b_s) + b_e)   (gate math in f32)
    s = jnp.dot(h2.astype(jnp.bfloat16), ws_ref[...],
                preferred_element_type=jnp.float32) + bs_ref[...]
    s = jnp.maximum(s, 0.0)
    w = jax.nn.sigmoid(
        jnp.dot(s.astype(jnp.bfloat16), we_ref[...],
                preferred_element_type=jnp.float32) + be_ref[...])
    h2 = h2 * w                            # padded lanes of h2 are 0 -> stay 0

    # residual + ReLU (padded lanes: relu(0 + 0) = 0)
    o_ref[...] = jnp.maximum(h2 + skip, 0.0)


def gcn_block(a_hat, x, params):
    """a_hat: [B, N, N] f32 normalized adjacency, x: [B, N, D] f32 node features."""
    B, N, D = x.shape
    ds = params["ws"].shape[1]
    Dp = _round_up(max(D, LANE), LANE)     # lane-dense feature width
    Sp = _round_up(max(ds, LANE), LANE)    # lane-dense SE squeeze width

    def pad2(w, r, c):
        return jnp.pad(w, ((0, r - w.shape[0]), (0, c - w.shape[1])))

    # bf16 storage for the MXU operands; f32 for everything touched by LN / bias / residual.
    a_bf = a_hat.astype(jnp.bfloat16)
    x_p = jnp.pad(x, ((0, 0), (0, 0), (0, Dp - D))).astype(jnp.float32)

    w1 = pad2(params["w1"], Dp, Dp).astype(jnp.bfloat16)
    w2 = pad2(params["w2"], Dp, Dp).astype(jnp.bfloat16)
    ws = pad2(params["ws"], Dp, Sp).astype(jnp.bfloat16)
    we = pad2(params["we"], Sp, Dp).astype(jnp.bfloat16)
    b1 = pad2(params["b1"], 1, Dp).astype(jnp.float32)
    b2 = pad2(params["b2"], 1, Dp).astype(jnp.float32)
    g1 = pad2(params["g1"], 1, Dp).astype(jnp.float32)
    bt1 = pad2(params["bt1"], 1, Dp).astype(jnp.float32)
    g2 = pad2(params["g2"], 1, Dp).astype(jnp.float32)
    bt2 = pad2(params["bt2"], 1, Dp).astype(jnp.float32)
    bs = pad2(params["bs"], 1, Sp).astype(jnp.float32)
    be = pad2(params["be"], 1, Dp).astype(jnp.float32)

    args = (a_bf, x_p, w1, b1, g1, bt1, w2, b2, g2, bt2, ws, bs, we, be)

    per_graph_a = pl.BlockSpec((None, N, N), lambda b: (b, 0, 0))
    per_graph_x = pl.BlockSpec((None, N, Dp), lambda b: (b, 0, 0))
    shared = lambda shape: pl.BlockSpec(shape, lambda b: (0, 0))  # VMEM-resident weights

    in_specs = [
        per_graph_a, per_graph_x,
        shared((Dp, Dp)), shared((1, Dp)), shared((1, Dp)), shared((1, Dp)),
        shared((Dp, Dp)), shared((1, Dp)), shared((1, Dp)), shared((1, Dp)),
        shared((Dp, Sp)), shared((1, Sp)), shared((Sp, Dp)), shared((1, Dp)),
    ]

    # Advisory cost hint for XLA scheduling around the custom call.
    flops = B * (2 * N * Dp * Dp * 2 + 2 * N * N * Dp * 2 + 2 * N * Dp * Sp * 2)
    transcendentals = B * N * (Dp + 2)     # sigmoid lanes + 2 rsqrt per row
    bytes_acc = (a_bf.size * 2 + x_p.size * 4 + B * N * Dp * 4
                 + (w1.size + w2.size + ws.size + we.size) * 2
                 + (b1.size + b2.size + g1.size + g2.size
                    + bt1.size + bt2.size + bs.size + be.size) * 4)

    out = pl.pallas_call(
        functools.partial(gcn_block_kernel, d_valid=D),
        out_shape=jax.ShapeDtypeStruct((B, N, Dp), jnp.float32),
        grid=(B,),
        in_specs=in_specs,
        out_specs=pl.BlockSpec((None, N, Dp), lambda b: (b, 0, 0)),
        compiler_params=pltpu.CompilerParams(
            dimension_semantics=("parallel",)),
        cost_estimate=pl.CostEstimate(
            flops=flops, transcendentals=transcendentals,
            bytes_accessed=bytes_acc),
    )(*args)

    return out[:, :, :D]
    # TODO(synk): for large N, tile A_hat with a (row_block, col_block) grid or switch to
    # an edge-list gather via PrefetchScalarGridSpec instead of the dense [N, N] matrix.


def normalized_adjacency(edge_index, num_nodes, improved=True):
    """Dense D^{-1/2} (A + fill*I) D^{-1/2} matching PyG gcn_norm (source->target flow).

    Note: adds fill*I unconditionally; if edge_index already contains self-loops this
    differs from PyG's add_remaining_self_loops (the demo graph has none, so it matches).
    """
    src, dst = edge_index[0], edge_index[1]
    a = jnp.zeros((num_nodes, num_nodes), jnp.float32)
    a = a.at[dst, src].add(1.0)             # aggregate messages from src at dst
    fill = 2.0 if improved else 1.0         # improved=True -> self-loop weight 2
    a = a + fill * jnp.eye(num_nodes, dtype=jnp.float32)
    deg = a.sum(axis=1)
    dinv = jnp.where(deg > 0, jax.lax.rsqrt(deg), 0.0)
    return dinv[:, None] * a * dinv[None, :]


def init_params(key, d, s_rate=0.125):
    ds = max(1, int(d * s_rate))
    ks = jax.random.split(key, 6)
    scale = lambda fan_in: 1.0 / jnp.sqrt(jnp.float32(fan_in))
    return {
        # GCNConv1 / GCNConv2 weights ([d_in, d_out]) and biases ([1, d_out])
        "w1": jax.random.normal(ks[0], (d, d), jnp.float32) * scale(d),
        "b1": jnp.zeros((1, d), jnp.float32),
        "w2": jax.random.normal(ks[1], (d, d), jnp.float32) * scale(d),
        "b2": jnp.zeros((1, d), jnp.float32),
        # LayerNorm affine params
        "g1": jnp.ones((1, d), jnp.float32),
        "bt1": jnp.zeros((1, d), jnp.float32),
        "g2": jnp.ones((1, d), jnp.float32),
        "bt2": jnp.zeros((1, d), jnp.float32),
        # SE squeeze / excite linears
        "ws": jax.random.normal(ks[2], (d, ds), jnp.float32) * scale(d),
        "bs": jax.random.normal(ks[3], (1, ds), jnp.float32) * scale(d),
        "we": jax.random.normal(ks[4], (ds, d), jnp.float32) * scale(ds),
        "be": jax.random.normal(ks[5], (1, d), jnp.float32) * scale(ds),
    }


def _reference(a_hat, x, params):
    """Pure-JAX f32 reference of the GCNBlock forward (per graph, vmapped over batch)."""
    def ln(v, g, b, eps=1e-5):
        mu = jnp.mean(v, -1, keepdims=True)
        var = jnp.mean(jnp.square(v - mu), -1, keepdims=True)
        return (v - mu) * jax.lax.rsqrt(var + eps) * g + b

    def one(a, xg):
        h = a @ (xg @ params["w1"]) + params["b1"]
        h = jnp.maximum(ln(h, params["g1"], params["bt1"]), 0.0)
        h2 = a @ (h @ params["w2"]) + params["b2"]
        h2 = ln(h2, params["g2"], params["bt2"])
        s = jnp.maximum(h2 @ params["ws"] + params["bs"], 0.0)
        w = jax.nn.sigmoid(s @ params["we"] + params["be"])
        return jnp.maximum(h2 * w + xg, 0.0)

    return jax.vmap(one)(a_hat, x)


if __name__ == "__main__":
    key = jax.random.PRNGKey(0)
    k_x, k_p = jax.random.split(key)

    B, N, D = 4, 16, 32         # 4 graphs, 16 nodes each, d_in == d_out == 32
    x = jax.random.normal(k_x, (B, N, D), jnp.float32)

    # deterministic ring graph (both directions), shared by all graphs in the batch
    idx = jnp.arange(N, dtype=jnp.int32)
    src = jnp.concatenate([idx, (idx + 1) % N])
    dst = jnp.concatenate([(idx + 1) % N, idx])
    edge_index = jnp.stack([src, dst], axis=0)

    params = init_params(k_p, D, s_rate=0.125)
    a_single = normalized_adjacency(edge_index, N, improved=True)
    a_hat = jnp.broadcast_to(a_single, (B, N, N))

    out = gcn_block(a_hat, x, params)
    jax.block_until_ready(out)

    assert out.shape == (B, N, D) and out.dtype == jnp.float32
    ref = _reference(a_hat, x, params)
    # bf16 MXU operands -> generous tolerance vs the f32 reference
    max_err = float(jnp.max(jnp.abs(out - ref)))
    assert max_err < 0.1, f"max abs err {max_err} too large"
    print("KERNEL_OK")
</pallas_src>

<mosaic_0001>
module attributes {stable_mosaic.version = 11 : i64} {
  func.func @gcn_block_kernel(%arg0: i32, %arg1: memref<1x16x16xbf16, #tpu.memory_space<vmem>>, %arg2: memref<1x16x128xf32, #tpu.memory_space<vmem>>, %arg3: memref<128x128xbf16, #tpu.memory_space<vmem>>, %arg4: memref<1x128xf32, #tpu.memory_space<vmem>>, %arg5: memref<1x128xf32, #tpu.memory_space<vmem>>, %arg6: memref<1x128xf32, #tpu.memory_space<vmem>>, %arg7: memref<128x128xbf16, #tpu.memory_space<vmem>>, %arg8: memref<1x128xf32, #tpu.memory_space<vmem>>, %arg9: memref<1x128xf32, #tpu.memory_space<vmem>>, %arg10: memref<1x128xf32, #tpu.memory_space<vmem>>, %arg11: memref<128x128xbf16, #tpu.memory_space<vmem>>, %arg12: memref<1x128xf32, #tpu.memory_space<vmem>>, %arg13: memref<128x128xbf16, #tpu.memory_space<vmem>>, %arg14: memref<1x128xf32, #tpu.memory_space<vmem>>, %arg15: memref<1x16x128xf32, #tpu.memory_space<vmem>>) attributes {dimension_semantics = [#tpu.dimension_semantics<parallel>], iteration_bounds = array<i64: 4>, scalar_prefetch = 0 : i64, scratch_operands = 0 : i64, tpu.core_type = #tpu.core_type<tc>, window_params = [{transform_indices = @transform_0, window_bounds = array<i64: 1, 16, 16>}, {transform_indices = @transform_1, window_bounds = array<i64: 1, 16, 128>}, {pipeline_mode = #tpu.pipeline_mode<synchronous>, transform_indices = @transform_2, window_bounds = array<i64: 128, 128>}, {pipeline_mode = #tpu.pipeline_mode<synchronous>, transform_indices = @transform_3, window_bounds = array<i64: 1, 128>}, {pipeline_mode = #tpu.pipeline_mode<synchronous>, transform_indices = @transform_4, window_bounds = array<i64: 1, 128>}, {pipeline_mode = #tpu.pipeline_mode<synchronous>, transform_indices = @transform_5, window_bounds = array<i64: 1, 128>}, {pipeline_mode = #tpu.pipeline_mode<synchronous>, transform_indices = @transform_6, window_bounds = array<i64: 128, 128>}, {pipeline_mode = #tpu.pipeline_mode<synchronous>, transform_indices = @transform_7, window_bounds = array<i64: 1, 128>}, {pipeline_mode = #tpu.pipeline_mode<synchronous>, transform_indices = @transform_8, window_bounds = array<i64: 1, 128>}, {pipeline_mode = #tpu.pipeline_mode<synchronous>, transform_indices = @transform_9, window_bounds = array<i64: 1, 128>}, {pipeline_mode = #tpu.pipeline_mode<synchronous>, transform_indices = @transform_10, window_bounds = array<i64: 128, 128>}, {pipeline_mode = #tpu.pipeline_mode<synchronous>, transform_indices = @transform_11, window_bounds = array<i64: 1, 128>}, {pipeline_mode = #tpu.pipeline_mode<synchronous>, transform_indices = @transform_12, window_bounds = array<i64: 128, 128>}, {pipeline_mode = #tpu.pipeline_mode<synchronous>, transform_indices = @transform_13, window_bounds = array<i64: 1, 128>}, {transform_indices = @transform_14, window_bounds = array<i64: 1, 16, 128>}]} {
    %c0 = arith.constant 0 : index
    %c0_0 = arith.constant 0 : index
    %c0_1 = arith.constant 0 : index
    %0 = vector.load %arg1[%c0, %c0_0, %c0_1] : memref<1x16x16xbf16, #tpu.memory_space<vmem>>, vector<1x16x16xbf16>
    %1 = vector.shape_cast %0 : vector<1x16x16xbf16> to vector<16x16xbf16>
    %c0_2 = arith.constant 0 : index
    %c0_3 = arith.constant 0 : index
    %c0_4 = arith.constant 0 : index
    %2 = vector.load %arg2[%c0_2, %c0_3, %c0_4] : memref<1x16x128xf32, #tpu.memory_space<vmem>>, vector<1x16x128xf32>
    %3 = vector.shape_cast %2 : vector<1x16x128xf32> to vector<16x128xf32>
    %4 = arith.truncf %3 : vector<16x128xf32> to vector<16x128xbf16>
    %c0_5 = arith.constant 0 : index
    %c0_6 = arith.constant 0 : index
    %5 = vector.load %arg3[%c0_5, %c0_6] : memref<128x128xbf16, #tpu.memory_space<vmem>>, vector<128x128xbf16>
    %cst = arith.constant dense<0.000000e+00> : vector<16x128xf32>
    %6 = tpu.matmul %4, %5, %cst {dimension_numbers = #tpu.dot_dimension_numbers<[1], [0], [0], [1], [0, 0, 1, 1], [], []>} : vector<16x128xbf16>, vector<128x128xbf16>, vector<16x128xf32> -> vector<16x128xf32>
    %7 = arith.truncf %6 : vector<16x128xf32> to vector<16x128xbf16>
    %cst_7 = arith.constant dense<0.000000e+00> : vector<16x128xf32>
    %8 = tpu.matmul %1, %7, %cst_7 {dimension_numbers = #tpu.dot_dimension_numbers<[1], [0], [0], [1], [0, 0, 1, 1], [], []>} : vector<16x16xbf16>, vector<16x128xbf16>, vector<16x128xf32> -> vector<16x128xf32>
    %c0_8 = arith.constant 0 : index
    %c0_9 = arith.constant 0 : index
    %9 = vector.load %arg4[%c0_8, %c0_9] : memref<1x128xf32, #tpu.memory_space<vmem>>, vector<1x128xf32>
    %10 = vector.broadcast %9 : vector<1x128xf32> to vector<16x128xf32>
    %11 = arith.addf %8, %10 : vector<16x128xf32>
    %c0_10 = arith.constant 0 : index
    %c0_11 = arith.constant 0 : index
    %12 = vector.load %arg5[%c0_10, %c0_11] : memref<1x128xf32, #tpu.memory_space<vmem>>, vector<1x128xf32>
    %c0_12 = arith.constant 0 : index
    %c0_13 = arith.constant 0 : index
    %13 = vector.load %arg6[%c0_12, %c0_13] : memref<1x128xf32, #tpu.memory_space<vmem>>, vector<1x128xf32>
    %cst_14 = arith.constant dense<0.000000e+00> : vector<16xf32>
    %14 = vector.multi_reduction <add>, %11, %cst_14 [1] : vector<16x128xf32> to vector<16xf32>
    %15 = vector.shape_cast %14 : vector<16xf32> to vector<16x1xf32>
    %cst_15 = arith.constant 3.125000e-02 : f32
    %16 = vector.broadcast %cst_15 : f32 to vector<16x1xf32>
    %17 = arith.mulf %15, %16 : vector<16x1xf32>
    %18 = arith.mulf %11, %11 : vector<16x128xf32>
    %cst_16 = arith.constant dense<0.000000e+00> : vector<16xf32>
    %19 = vector.multi_reduction <add>, %18, %cst_16 [1] : vector<16x128xf32> to vector<16xf32>
    %20 = vector.shape_cast %19 : vector<16xf32> to vector<16x1xf32>
    %cst_17 = arith.constant 3.125000e-02 : f32
    %21 = vector.broadcast %cst_17 : f32 to vector<16x1xf32>
    %22 = arith.mulf %20, %21 : vector<16x1xf32>
    %23 = arith.mulf %17, %17 : vector<16x1xf32>
    %24 = arith.subf %22, %23 : vector<16x1xf32>
    %25 = vector.broadcast %17 : vector<16x1xf32> to vector<16x128xf32>
    %26 = arith.subf %11, %25 : vector<16x128xf32>
    %cst_18 = arith.constant 9.99999974E-6 : f32
    %27 = vector.broadcast %cst_18 : f32 to vector<16x1xf32>
    %28 = arith.addf %24, %27 : vector<16x1xf32>
    %29 = math.rsqrt %28 : vector<16x1xf32>
    %30 = vector.broadcast %29 : vector<16x1xf32> to vector<16x128xf32>
    %31 = arith.mulf %26, %30 : vector<16x128xf32>
    %32 = vector.broadcast %12 : vector<1x128xf32> to vector<16x128xf32>
    %33 = arith.mulf %31, %32 : vector<16x128xf32>
    %34 = vector.broadcast %13 : vector<1x128xf32> to vector<16x128xf32>
    %35 = arith.addf %33, %34 : vector<16x128xf32>
    %cst_19 = arith.constant 0.000000e+00 : f32
    %36 = vector.broadcast %cst_19 : f32 to vector<16x128xf32>
    %37 = arith.maximumf %35, %36 : vector<16x128xf32>
    %38 = arith.truncf %37 : vector<16x128xf32> to vector<16x128xbf16>
    %c0_20 = arith.constant 0 : index
    %c0_21 = arith.constant 0 : index
    %39 = vector.load %arg7[%c0_20, %c0_21] : memref<128x128xbf16, #tpu.memory_space<vmem>>, vector<128x128xbf16>
    %cst_22 = arith.constant dense<0.000000e+00> : vector<16x128xf32>
    %40 = tpu.matmul %38, %39, %cst_22 {dimension_numbers = #tpu.dot_dimension_numbers<[1], [0], [0], [1], [0, 0, 1, 1], [], []>} : vector<16x128xbf16>, vector<128x128xbf16>, vector<16x128xf32> -> vector<16x128xf32>
    %41 = arith.truncf %40 : vector<16x128xf32> to vector<16x128xbf16>
    %cst_23 = arith.constant dense<0.000000e+00> : vector<16x128xf32>
    %42 = tpu.matmul %1, %41, %cst_23 {dimension_numbers = #tpu.dot_dimension_numbers<[1], [0], [0], [1], [0, 0, 1, 1], [], []>} : vector<16x16xbf16>, vector<16x128xbf16>, vector<16x128xf32> -> vector<16x128xf32>
    %c0_24 = arith.constant 0 : index
    %c0_25 = arith.constant 0 : index
    %43 = vector.load %arg8[%c0_24, %c0_25] : memref<1x128xf32, #tpu.memory_space<vmem>>, vector<1x128xf32>
    %44 = vector.broadcast %43 : vector<1x128xf32> to vector<16x128xf32>
    %45 = arith.addf %42, %44 : vector<16x128xf32>
    %c0_26 = arith.constant 0 : index
    %c0_27 = arith.constant 0 : index
    %46 = vector.load %arg9[%c0_26, %c0_27] : memref<1x128xf32, #tpu.memory_space<vmem>>, vector<1x128xf32>
    %c0_28 = arith.constant 0 : index
    %c0_29 = arith.constant 0 : index
    %47 = vector.load %arg10[%c0_28, %c0_29] : memref<1x128xf32, #tpu.memory_space<vmem>>, vector<1x128xf32>
    %cst_30 = arith.constant dense<0.000000e+00> : vector<16xf32>
    %48 = vector.multi_reduction <add>, %45, %cst_30 [1] : vector<16x128xf32> to vector<16xf32>
    %49 = vector.shape_cast %48 : vector<16xf32> to vector<16x1xf32>
    %cst_31 = arith.constant 3.125000e-02 : f32
    %50 = vector.broadcast %cst_31 : f32 to vector<16x1xf32>
    %51 = arith.mulf %49, %50 : vector<16x1xf32>
    %52 = arith.mulf %45, %45 : vector<16x128xf32>
    %cst_32 = arith.constant dense<0.000000e+00> : vector<16xf32>
    %53 = vector.multi_reduction <add>, %52, %cst_32 [1] : vector<16x128xf32> to vector<16xf32>
    %54 = vector.shape_cast %53 : vector<16xf32> to vector<16x1xf32>
    %cst_33 = arith.constant 3.125000e-02 : f32
    %55 = vector.broadcast %cst_33 : f32 to vector<16x1xf32>
    %56 = arith.mulf %54, %55 : vector<16x1xf32>
    %57 = arith.mulf %51, %51 : vector<16x1xf32>
    %58 = arith.subf %56, %57 : vector<16x1xf32>
    %59 = vector.broadcast %51 : vector<16x1xf32> to vector<16x128xf32>
    %60 = arith.subf %45, %59 : vector<16x128xf32>
    %cst_34 = arith.constant 9.99999974E-6 : f32
    %61 = vector.broadcast %cst_34 : f32 to vector<16x1xf32>
    %62 = arith.addf %58, %61 : vector<16x1xf32>
    %63 = math.rsqrt %62 : vector<16x1xf32>
    %64 = vector.broadcast %63 : vector<16x1xf32> to vector<16x128xf32>
    %65 = arith.mulf %60, %64 : vector<16x128xf32>
    %66 = vector.broadcast %46 : vector<1x128xf32> to vector<16x128xf32>
    %67 = arith.mulf %65, %66 : vector<16x128xf32>
    %68 = vector.broadcast %47 : vector<1x128xf32> to vector<16x128xf32>
    %69 = arith.addf %67, %68 : vector<16x128xf32>
    %70 = arith.truncf %69 : vector<16x128xf32> to vector<16x128xbf16>
    %c0_35 = arith.constant 0 : index
    %c0_36 = arith.constant 0 : index
    %71 = vector.load %arg11[%c0_35, %c0_36] : memref<128x128xbf16, #tpu.memory_space<vmem>>, vector<128x128xbf16>
    %cst_37 = arith.constant dense<0.000000e+00> : vector<16x128xf32>
    %72 = tpu.matmul %70, %71, %cst_37 {dimension_numbers = #tpu.dot_dimension_numbers<[1], [0], [0], [1], [0, 0, 1, 1], [], []>} : vector<16x128xbf16>, vector<128x128xbf16>, vector<16x128xf32> -> vector<16x128xf32>
    %c0_38 = arith.constant 0 : index
    %c0_39 = arith.constant 0 : index
    %73 = vector.load %arg12[%c0_38, %c0_39] : memref<1x128xf32, #tpu.memory_space<vmem>>, vector<1x128xf32>
    %74 = vector.broadcast %73 : vector<1x128xf32> to vector<16x128xf32>
    %75 = arith.addf %72, %74 : vector<16x128xf32>
    %cst_40 = arith.constant 0.000000e+00 : f32
    %76 = vector.broadcast %cst_40 : f32 to vector<16x128xf32>
    %77 = arith.maximumf %75, %76 : vector<16x128xf32>
    %78 = arith.truncf %77 : vector<16x128xf32> to vector<16x128xbf16>
    %c0_41 = arith.constant 0 : index
    %c0_42 = arith.constant 0 : index
    %79 = vector.load %arg13[%c0_41, %c0_42] : memref<128x128xbf16, #tpu.memory_space<vmem>>, vector<128x128xbf16>
    %cst_43 = arith.constant dense<0.000000e+00> : vector<16x128xf32>
    %80 = tpu.matmul %78, %79, %cst_43 {dimension_numbers = #tpu.dot_dimension_numbers<[1], [0], [0], [1], [0, 0, 1, 1], [], []>} : vector<16x128xbf16>, vector<128x128xbf16>, vector<16x128xf32> -> vector<16x128xf32>
    %c0_44 = arith.constant 0 : index
    %c0_45 = arith.constant 0 : index
    %81 = vector.load %arg14[%c0_44, %c0_45] : memref<1x128xf32, #tpu.memory_space<vmem>>, vector<1x128xf32>
    %82 = vector.broadcast %81 : vector<1x128xf32> to vector<16x128xf32>
    %83 = arith.addf %80, %82 : vector<16x128xf32>
    %84 = arith.negf %83 : vector<16x128xf32>
    %85 = math.exp %84 : vector<16x128xf32>
    %cst_46 = arith.constant 1.000000e+00 : f32
    %86 = vector.broadcast %cst_46 : f32 to vector<16x128xf32>
    %87 = arith.addf %86, %85 : vector<16x128xf32>
    %88 = arith.divf %86, %87 : vector<16x128xf32>
    %89 = arith.mulf %69, %88 : vector<16x128xf32>
    %90 = arith.addf %89, %3 : vector<16x128xf32>
    %cst_47 = arith.constant 0.000000e+00 : f32
    %91 = vector.broadcast %cst_47 : f32 to vector<16x128xf32>
    %92 = arith.maximumf %90, %91 : vector<16x128xf32>
    %c0_48 = arith.constant 0 : index
    %c0_49 = arith.constant 0 : index
    %c0_50 = arith.constant 0 : index
    %93 = vector.load %arg15[%c0_48, %c0_49, %c0_50] : memref<1x16x128xf32, #tpu.memory_space<vmem>>, vector<1x16x128xf32>
    %94 = vector.shape_cast %93 : vector<1x16x128xf32> to vector<16x128xf32>
    %95 = vector.shape_cast %92 : vector<16x128xf32> to vector<1x16x128xf32>
    tpu.vector_store %arg15[%c0_48, %c0_49, %c0_50], %95 {strides = array<i32>} : memref<1x16x128xf32, #tpu.memory_space<vmem>>, vector<1x16x128xf32>,
    return
  }
  func.func @transform_0(%arg0: i32) -> (i32, i32, i32) {
    %c0_i32 = arith.constant 0 : i32
    %c0_i32_0 = arith.constant 0 : i32
    %c0_i32_1 = arith.constant 0 : i32
    return %arg0, %c0_i32, %c0_i32_0 : i32, i32, i32
  }
  func.func @transform_1(%arg0: i32) -> (i32, i32, i32) {
    %c0_i32 = arith.constant 0 : i32
    %c0_i32_0 = arith.constant 0 : i32
    %c0_i32_1 = arith.constant 0 : i32
    return %arg0, %c0_i32, %c0_i32_0 : i32, i32, i32
  }
  func.func @transform_2(%arg0: i32) -> (i32, i32) {
    %c0_i32 = arith.constant 0 : i32
    %c0_i32_0 = arith.constant 0 : i32
    %c0_i32_1 = arith.constant 0 : i32
    return %c0_i32, %c0_i32_0 : i32, i32
  }
  func.func @transform_3(%arg0: i32) -> (i32, i32) {
    %c0_i32 = arith.constant 0 : i32
    %c0_i32_0 = arith.constant 0 : i32
    %c0_i32_1 = arith.constant 0 : i32
    return %c0_i32, %c0_i32_0 : i32, i32
  }
  func.func @transform_4(%arg0: i32) -> (i32, i32) {
    %c0_i32 = arith.constant 0 : i32
    %c0_i32_0 = arith.constant 0 : i32
    %c0_i32_1 = arith.constant 0 : i32
    return %c0_i32, %c0_i32_0 : i32, i32
  }
  func.func @transform_5(%arg0: i32) -> (i32, i32) {
    %c0_i32 = arith.constant 0 : i32
    %c0_i32_0 = arith.constant 0 : i32
    %c0_i32_1 = arith.constant 0 : i32
    return %c0_i32, %c0_i32_0 : i32, i32
  }
  func.func @transform_6(%arg0: i32) -> (i32, i32) {
    %c0_i32 = arith.constant 0 : i32
    %c0_i32_0 = arith.constant 0 : i32
    %c0_i32_1 = arith.constant 0 : i32
    return %c0_i32, %c0_i32_0 : i32, i32
  }
  func.func @transform_7(%arg0: i32) -> (i32, i32) {
    %c0_i32 = arith.constant 0 : i32
    %c0_i32_0 = arith.constant 0 : i32
    %c0_i32_1 = arith.constant 0 : i32
    return %c0_i32, %c0_i32_0 : i32, i32
  }
  func.func @transform_8(%arg0: i32) -> (i32, i32) {
    %c0_i32 = arith.constant 0 : i32
    %c0_i32_0 = arith.constant 0 : i32
    %c0_i32_1 = arith.constant 0 : i32
    return %c0_i32, %c0_i32_0 : i32, i32
  }
  func.func @transform_9(%arg0: i32) -> (i32, i32) {
    %c0_i32 = arith.constant 0 : i32
    %c0_i32_0 = arith.constant 0 : i32
    %c0_i32_1 = arith.constant 0 : i32
    return %c0_i32, %c0_i32_0 : i32, i32
  }
  func.func @transform_10(%arg0: i32) -> (i32, i32) {
    %c0_i32 = arith.constant 0 : i32
    %c0_i32_0 = arith.constant 0 : i32
    %c0_i32_1 = arith.constant 0 : i32
    return %c0_i32, %c0_i32_0 : i32, i32
  }
  func.func @transform_11(%arg0: i32) -> (i32, i32) {
    %c0_i32 = arith.constant 0 : i32
    %c0_i32_0 = arith.constant 0 : i32
    %c0_i32_1 = arith.constant 0 : i32
    return %c0_i32, %c0_i32_0 : i32, i32
  }
  func.func @transform_12(%arg0: i32) -> (i32, i32) {
    %c0_i32 = arith.constant 0 : i32
    %c0_i32_0 = arith.constant 0 : i32
    %c0_i32_1 = arith.constant 0 : i32
    return %c0_i32, %c0_i32_0 : i32, i32
  }
  func.func @transform_13(%arg0: i32) -> (i32, i32) {
    %c0_i32 = arith.constant 0 : i32
    %c0_i32_0 = arith.constant 0 : i32
    %c0_i32_1 = arith.constant 0 : i32
    return %c0_i32, %c0_i32_0 : i32, i32
  }
  func.func @transform_14(%arg0: i32) -> (i32, i32, i32) {
    %c0_i32 = arith.constant 0 : i32
    %c0_i32_0 = arith.constant 0 : i32
    %c0_i32_1 = arith.constant 0 : i32
    return %arg0, %c0_i32, %c0_i32_0 : i32, i32, i32
  }
}

</mosaic_0001>

<bundles_post_ra>
// kernel: tpu_custom_call.1
= control target key start
LH: loop header
LB: loop body
LE: loop exit
PB: predicated region body
PF: predicated region fallthrough
CT: control target
= control target key end

     0   :  { %s2545_s0 = inlined_call_operand.hbm [shape: bf16[4,16,16], index: 0, kind: input, shape index: {}]   ;;  %s2546_s1 = inlined_call_operand.hbm [shape: f32[4,16,128], index: 1, kind: input, shape index: {}]   ;;  %s2547_s2 = inlined_call_operand.hbm [shape: bf16[128,128], index: 2, kind: input, shape index: {}]   ;;  %s2548_s3 = inlined_call_operand.vmem [shape: f32[1,128], index: 3, kind: input, shape index: {}]   ;;  %s2549_s4 = inlined_call_operand.vmem [shape: f32[1,128], index: 4, kind: input, shape index: {}]   ;;  %s2550_s5 = inlined_call_operand.vmem [shape: f32[1,128], index: 5, kind: input, shape index: {}]   ;;  %s2551_s6 = inlined_call_operand.hbm [shape: bf16[128,128], index: 6, kind: input, shape index: {}]   ;;  %s2552_s7 = inlined_call_operand.vmem [shape: f32[1,128], index: 7, kind: input, shape index: {}]   ;;  %s2553_s8 = inlined_call_operand.vmem [shape: f32[1,128], index: 8, kind: input, shape index: {}]   ;;  %s2554_s9 = inlined_call_operand.vmem [shape: f32[1,128], index: 9, kind: input, shape index: {}]   ;;  %s2555_s10 = inlined_call_operand.hbm [shape: bf16[128,128], index: 10, kind: input, shape index: {}]   ;;  %s2556_s11 = inlined_call_operand.vmem [shape: f32[1,128], index: 11, kind: input, shape index: {}]   ;;  %s2557_s12 = inlined_call_operand.hbm [shape: bf16[128,128], index: 12, kind: input, shape index: {}]   ;;  %s2558_s13 = inlined_call_operand.vmem [shape: f32[1,128], index: 13, kind: input, shape index: {}]   ;;  %s2559_s14 = inlined_call_operand.hbm [shape: f32[4,16,128], index: 14, kind: output, shape index: {}]  }
   0x1   :  { %2568 = sst [smem:[#allocation22_spill]] %s2545_s0 }
   0x2   :  { %2569 = sst [smem:[#allocation23_spill]] %s2547_s2 }
   0x3   :  { %2570 = sst [smem:[#allocation24_spill]] %s2551_s6 }
   0x4   :  { %2571 = sst [smem:[#allocation25_spill]] %s2552_s7 }
   0x5   :  { %2572 = sst [smem:[#allocation26_spill]] %s2553_s8 }
   0x6   :  { %2573 = sst [smem:[#allocation27_spill]] %s2554_s9 }
   0x7   :  { %2574 = sst [smem:[#allocation28_spill]] %s2555_s10 }
   0x8   :  { %2575 = sst [smem:[#allocation29_spill]] %s2556_s11 }
   0x9   :  { %2576 = sst [smem:[#allocation30_spill]] %s2558_s13 }
   0xa   :  { %2577 = sst [smem:[#allocation31_spill]] %s2559_s14 }
   0xb   :  { %19 = vsyncpa [#allocation3], 0 }
   0xc   :  { %21 = vsyncpa [#allocation3 + $0x1], 0 }
   0xd   :  { %22 = vsyncpa [#allocation6], 0 }
   0xe   :  { %24 = vsyncpa [#allocation6 + $0x1], 0 }
   0xf   :  { %25 = vsyncpa [#allocation9], 0 }
  0x10   :  { %26 = vsyncpa [#allocation12], 0 }
  0x11   :  { %27 = vsyncpa [#allocation4], 0 }
  0x12   :  { %29 = vsyncpa [#allocation4 + $0x1], 0  ;;  %s2095_s29 = smov 0   ;;  %s2097_s30 = smov 0  }
  0x13   :  { %s2099_s15 = smov 0   ;;  %s2101_s16 = smov 0  }
  0x14 LB: > { %2578 = sst [smem:[#allocation20_spill]] %s1991_s29  ;;  %s2116_s17 = sadd.s32 4294967295, %s2003_s16   ;;  %s2003_s16 = sphi %s2101_s16, %s2615_s16   ;;  %s1999_s15 = sphi %s2099_s15, %s2614_s15   ;;  %s1995_s30 = sphi %s2097_s30, %s2613_s30   ;;  %s1991_s29 = sphi %s2095_s29, %s2612_s29  }
  0x15   : > { %s1394_s18 = sadd.s32 4294967294, %s2003_s16   ;;  %p55_p0 = scmp.ne.s32.totalorder %s1995_s30, %s1991_s29 }
  0x16   : > { %p2563_p1 = scmp.eq.s32.totalorder %s2116_s17, 0  ;;  %p363_p3 = scmp.eq.s32.totalorder %s1394_s18, 3 }
  0x17   : > { %p1395_p5 = scmp.ge.s32.totalorder %s2003_s16, 1  ;;  %p370_p7 = scmp.lt.s32.totalorder %s2003_s16, 5 }
  0x18   : > { %p2125_p4 = por %p2563_p1, %p55_p0  ;;  %p2130_p6 = por %p363_p3, %p55_p0 }
  0x19   : > { %p2135_p8 = pnand %p1395_p5, %p370_p7  ;;  %s2005_s22 = smov [#allocation7]  }
  0x1a   : > { %s2579_s19 = scalar_select %p2125_p4, 1, 0 }
  0x1b   : > { %s2580_s20 = scalar_select %p2130_p6, 1, 0 }
  0x1c   : > { %s2582_s21 = scalar_select %p2135_p8, 1, 0 }
  0x1d   : > { %2581 = sst [smem:[#allocation21_spill]] %s2580_s20  ;;  %s382_s23 = sshll.u32 %s2005_s22, 4  ;;  %s2139_s23 = int_to_ptr.vmem [resolvable:$true] %s382_s23 }
  0x1e   : > { %p1622_p9 = pneg %p2135_p8  ;;  %s2006_s25 = smov [#allocation8]  }
  0x1f   : > { %s404_s26 = sshll.u32 %s2006_s25, 4  ;;  %s2007_s27 = smov [#allocation10]   ;;  %s2149_s26 = int_to_ptr.vmem [resolvable:$true] %s404_s26 }
  0x20   : > { %p2145_p10 = pnand %p1622_p9, %p2563_p1  ;;  %s2151_s28 = sshll.u32 %s2007_s27, 4  ;;  %s427_s28 = int_to_ptr.vmem [resolvable:$true] %s2151_s28 }
  0x21   : > { %s2584_s2 = sld [smem:[#allocation23_spill]] }
  0x22   : > { %p2161_p12 = pneg %p2145_p10 }
  0x27   : > { %s1749_s22 = scalar_lea.hbm %s2584_s2, 1024 }
  0x28   : > { %p1750_p11 = scmp.ne.s32.totalorder %s2584_s2, %s1749_s22  ;;  %p1756_p3 = scmp.lt.u32.totalorder %s1749_s22, %s2584_s2 }
  0x2a   : > { %p1752_p13 = pnand %p2161_p12, %p1750_p11 }
  0x2c   : > { %p1753_p0 = pneg %p1752_p13 }
  0x2e   : > { %p1758_p5 = pnand %p1756_p3, %p1753_p0 }
  0x30   : > { %1761 = shalt.err (!%p1758_p5)
}
  0x31   : > { %s1762_s14 = scalar_lea.vmem %s2139_s23, 1024  ;;  %p1770_p2 = scmp.lt.s32.totalorder %s2139_s23, %s2139_s23 }
  0x32   : > { %p1763_p7 = scmp.ne.s32.totalorder %s2139_s23, %s1762_s14  ;;  %p1771_p6 = scmp.lt.s32.totalorder %s1762_s14, %s1762_s14 }
  0x34   : > { %p1765_p9 = pnand %p1763_p7, %p2161_p12  ;;  %p1772_p11 = por %p1771_p6, %p1770_p2 }
  0x36   : > { %p1766_p1 = pneg %p1765_p9 }
  0x38   : > { %p1773_p13 = pnand %p1772_p11, %p1766_p1 }
  0x3a   : > { %1776 = shalt.err (!%p1773_p13)
}
  0x3b   : > { %s2566_s29 = smov 64   ;;  %s2567_s20 = smov 4  }
  0x3c   : > { %1625 = dma.hbm_to_vmem [thread:$0]  (!%p2145_p10), %s2584_s2, 1024, %s2139_s23, [#allocation6], %s2566_s29, %s2566_s29, %s2567_s20  }
  0x3d   : > { %s2586_s6 = sld [smem:[#allocation24_spill]] }
  0x43   : > { %s1777_s14 = scalar_lea.hbm %s2586_s6, 1024 }
  0x44   : > { %p1778_p1 = scmp.ne.s32.totalorder %s2586_s6, %s1777_s14  ;;  %p1784_p0 = scmp.lt.u32.totalorder %s1777_s14, %s2586_s6 }
  0x46   : > { %p1780_p2 = pnand %p1778_p1, %p2161_p12 }
  0x48   : > { %p1781_p6 = pneg %p1780_p2 }
  0x4a   : > { %p1786_p3 = pnand %p1784_p0, %p1781_p6 }
  0x4c   : > { %1789 = shalt.err (!%p1786_p3)
}
  0x4d   : > { %s1790_s23 = scalar_lea.vmem %s2149_s26, 1024  ;;  %p1798_p11 = scmp.lt.s32.totalorder %s2149_s26, %s2149_s26 }
  0x4e   : > { %p1791_p5 = scmp.ne.s32.totalorder %s2149_s26, %s1790_s23  ;;  %p1799_p13 = scmp.lt.s32.totalorder %s1790_s23, %s1790_s23 }
  0x50   : > { %p1793_p7 = pnand %p1791_p5, %p2161_p12  ;;  %p1800_p1 = por %p1799_p13, %p1798_p11 }
  0x52   : > { %p1794_p9 = pneg %p1793_p7 }
  0x54   : > { %p1801_p2 = pnand %p1800_p1, %p1794_p9 }
  0x56   : > { %1804 = shalt.err (!%p1801_p2)
}
  0x57   : > { %1628 = dma.hbm_to_vmem [thread:$0]  (!%p2145_p10), %s2586_s6, 1024, %s2149_s26, [#allocation9], %s2566_s29, %s2566_s29, %s2567_s20  }
  0x58   : > { %s2587_s10 = sld [smem:[#allocation28_spill]] }
  0x5e   : > { %s1805_s18 = scalar_lea.hbm %s2587_s10, 1024 }
  0x5f   : > { %p1806_p6 = scmp.ne.s32.totalorder %s2587_s10, %s1805_s18  ;;  %p1812_p5 = scmp.lt.u32.totalorder %s1805_s18, %s2587_s10 }
  0x61   : > { %p1808_p0 = pnand %p1806_p6, %p2161_p12 }
  0x63   : > { %p1809_p3 = pneg %p1808_p0 }
  0x65   : > { %p1814_p7 = pnand %p1812_p5, %p1809_p3 }
  0x67   : > { %1817 = shalt.err (!%p1814_p7)
}
  0x68   : > { %s1818_s23 = scalar_lea.vmem %s427_s28, 1024  ;;  %p1826_p1 = scmp.lt.s32.totalorder %s427_s28, %s427_s28 }
  0x69   : > { %p1819_p9 = scmp.ne.s32.totalorder %s427_s28, %s1818_s23  ;;  %p1827_p2 = scmp.lt.s32.totalorder %s1818_s23, %s1818_s23 }
  0x6b   : > { %p1821_p11 = pnand %p1819_p9, %p2161_p12  ;;  %p1828_p4 = por %p1827_p2, %p1826_p1 }
  0x6d   : > { %p1822_p13 = pneg %p1821_p11 }
  0x6f   : > { %p1829_p8 = pnand %p1828_p4, %p1822_p13 }
  0x71   : > { %1832 = shalt.err (!%p1829_p8)
}
  0x72   : > { %1631 = dma.hbm_to_vmem [thread:$0]  (!%p2145_p10), %s2587_s10, 1024, %s427_s28, [#allocation9], %s2566_s29, %s2566_s29, %s2567_s20  }
  0x73   : > { %s2010_s8 = smov [#allocation11]   ;;  %s1833_s22 = scalar_lea.hbm %s2557_s12, 1024 }
  0x74   : > { %s442_s9 = sshll.u32 %s2010_s8, 4  ;;  %p1834_p4 = scmp.ne.s32.totalorder %s2557_s12, %s1833_s22  ;;  %s443_s9 = int_to_ptr.vmem [resolvable:$true] %s442_s9 }
  0x75   : > { %p1840_p0 = scmp.lt.u32.totalorder %s1833_s22, %s2557_s12 }
  0x76   : > { %p1836_p8 = pnand %p1834_p4, %p2161_p12 }
  0x78   : > { %p1837_p6 = pneg %p1836_p8 }
  0x7a   : > { %p1842_p3 = pnand %p1840_p0, %p1837_p6 }
  0x7c   : > { %1845 = shalt.err (!%p1842_p3)
}
  0x7d   : > { %s1846_s28 = scalar_lea.vmem %s443_s9, 1024  ;;  %p1854_p11 = scmp.lt.s32.totalorder %s443_s9, %s443_s9 }
  0x7e   : > { %p1847_p5 = scmp.ne.s32.totalorder %s443_s9, %s1846_s28  ;;  %p1855_p13 = scmp.lt.s32.totalorder %s1846_s28, %s1846_s28 }
  0x80   : > { %p1849_p7 = pnand %p1847_p5, %p2161_p12  ;;  %p1856_p1 = por %p1855_p13, %p1854_p11 }
  0x82   : > { %p1850_p9 = pneg %p1849_p7 }
  0x84   : > { %p1857_p2 = pnand %p1856_p1, %p1850_p9 }
  0x86   : > { %1860 = shalt.err (!%p1857_p2)
}
  0x87   : > { %1634 = dma.hbm_to_vmem [thread:$0]  (!%p2145_p10), %s2557_s12, 1024, %s443_s9, [#allocation12], %s2566_s29, %s2566_s29, %s2567_s20  }
  0x88   : > { %s2255_s13 = sadd.s32 1, %s2003_s16   ;;  %s42_s24 = sadd.s32 1, %s1999_s15 }
  0x89   : > { %s39_s8 = ssub.s32 %s2003_s16, %s2255_s13  ;;  %p49_p12 = scmp.ne.s32.totalorder %s1999_s15, %s1995_s30 }
  0x8a   : > { %p40_p4 = scmp.eq.s32.totalorder %s39_s8, 0  ;;  %p50_p8 = scmp.eq.s32.totalorder %s2003_s16, 0 }
  0x8b   : > { %p2588_p6 = scmp.eq.s32.totalorder %s2116_s17, 3  ;;  %p1650_p3 = scmp.lt.s32.totalorder %s2003_s16, 4 }
  0x8c   : > { %s2271_s18 = scalar_select %p40_p4, %s1999_s15, %s42_s24  }
  0x8d   : > { %p2265_p0 = por %p2588_p6, %p49_p12  ;;  %p51_p5 = por %p50_p8, %p49_p12 }
  0x8e   : > { %s2274_s22 = sand.u32 1, %s1999_s15   ;;  %s1465_s25 = sshll.u32 %s2003_s16, 7 }
  0x8f   : > { %s1401_s9 = sshll.u32 %s2274_s22, 3  ;;  %s2590_s0 = sld [smem:[#allocation22_spill]] }
  0x90   : > { %s463_s28 = scalar_lea.vmem [#allocation2], %s1401_s9  ;;  %p2285_p10 = pnand %p1650_p3, %p51_p5 }
  0x91   : > { %s470_s26 = sshll.u32 %s463_s28, 4  ;;  %s1404_s8 = sshll.u32 %s2274_s22, 4  ;;  %s2283_s26 = int_to_ptr.vmem [resolvable:$true] %s470_s26 }
  0x92   : > { %s460_s29 = scalar_lea.sflag [#allocation3], %s2274_s22  ;;  %p1863_p9 = pneg %p2285_p10 }
  0x95   : > { %s2281_s23 = scalar_lea.hbm %s2590_s0, %s1465_s25  ;;  %s1866_s14 = scalar_lea.hbm %s2590_s0, 512 }
  0x96   : > { %s1861_s27 = scalar_lea.hbm %s2281_s23, 128  ;;  %p1867_p1 = scmp.lt.u32.totalorder %s2281_s23, %s2590_s0 }
  0x97   : > { %p1862_p7 = scmp.ne.s32.totalorder %s2281_s23, %s1861_s27  ;;  %p1868_p2 = scmp.lt.u32.totalorder %s1866_s14, %s1861_s27 }
  0x98   : > { %p1870_p4 = scmp.lt.u32.totalorder %s1861_s27, %s2281_s23 }
  0x99   : > { %p1864_p11 = pnand %p1863_p9, %p1862_p7  ;;  %p1869_p12 = por %p1868_p2, %p1867_p1 }
  0x9b   : > { %p1865_p13 = pneg %p1864_p11  ;;  %p1871_p8 = por %p1870_p4, %p1869_p12 }
  0x9d   : > { %p1872_p6 = pnand %p1871_p8, %p1865_p13 }
  0x9f   : > { %1875 = shalt.err (!%p1872_p6)
}
  0xa0   : > { %s1876_s24 = scalar_lea.vmem %s2283_s26, 128  ;;  %s2011_s9 = smov [#allocation2]  }
  0xa1   : > { %p1877_p3 = scmp.ne.s32.totalorder %s2283_s26, %s1876_s24  ;;  %s1881_s25 = sshll.u32 %s2011_s9, 4  ;;  %s1882_s25 = int_to_ptr.vmem [resolvable:$false] %s1881_s25 }
  0xa2   : > { %s1883_s20 = scalar_lea.vmem %s1882_s25, 256  ;;  %p1884_p11 = scmp.lt.s32.totalorder %s2283_s26, %s1882_s25 }
  0xa3   : > { %p1879_p5 = pnand %p1877_p3, %p1863_p9  ;;  %p1885_p1 = scmp.lt.s32.totalorder %s1883_s20, %s1876_s24 }
  0xa5   : > { %p1880_p7 = pneg %p1879_p5  ;;  %p1886_p2 = por %p1885_p1, %p1884_p11 }
  0xa7   : > { %p1887_p12 = pnand %p1886_p2, %p1880_p7 }
  0xa9   : > { %1890 = shalt.err (!%p1887_p12)
}
  0xaa   : > { %s2592_s27 = smov 4   ;;  %s2593_s14 = smov 64  }
  0xab   : > { %1638 = dma.hbm_to_vmem [thread:$0]  (!%p2285_p10), %s2281_s23, 128, %s2283_s26, %s460_s29, %s2593_s14, %s2593_s14, %s2592_s27  }
  0xac   : > { %s1466_s28 = sshll.u32 %s2003_s16, 8  ;;  %s484_s20 = scalar_lea.vmem [#allocation5], %s1404_s8 }
  0xad   : > { %s2326_s25 = scalar_lea.hbm %s2546_s1, %s1466_s28  ;;  %s491_s0 = sshll.u32 %s484_s20, 4  ;;  %s2330_s0 = int_to_ptr.vmem [resolvable:$true] %s491_s0 }
  0xae   : > { %s2594_s2 = sand.u32 1, %s2003_s16   ;;  %s1891_s10 = scalar_lea.hbm %s2326_s25, 256 }
  0xaf   : > { %s2334_s6 = scalar_lea.sflag [#allocation6], %s2594_s2  ;;  %p1892_p13 = scmp.ne.s32.totalorder %s2326_s25, %s1891_s10 }
  0xb0   : > { %s1896_s22 = scalar_lea.hbm %s2546_s1, 1024  ;;  %p1897_p6 = scmp.lt.u32.totalorder %s2326_s25, %s2546_s1 }
  0xb1   : > { %p1894_p4 = pnand %p1892_p13, %p1863_p9  ;;  %p1898_p3 = scmp.lt.u32.totalorder %s1896_s22, %s1891_s10 }
  0xb2   : > { %p1900_p7 = scmp.lt.u32.totalorder %s1891_s10, %s2326_s25 }
  0xb3   : > { %p1895_p8 = pneg %p1894_p4  ;;  %p1899_p5 = por %p1898_p3, %p1897_p6 }
  0xb5   : > { %p1901_p11 = por %p1900_p7, %p1899_p5 }
  0xb7   : > { %p1902_p1 = pnand %p1901_p11, %p1895_p8 }
  0xb9   : > { %1905 = shalt.err (!%p1902_p1)
}
  0xba   : > { %s1906_s2 = scalar_lea.vmem %s2330_s0, 256  ;;  %s2012_s8 = smov [#allocation5]  }
  0xbb   : > { %p1907_p2 = scmp.ne.s32.totalorder %s2330_s0, %s1906_s2  ;;  %s1911_s14 = sshll.u32 %s2012_s8, 4  ;;  %s1912_s14 = int_to_ptr.vmem [resolvable:$false] %s1911_s14 }
  0xbc   : > { %s1913_s28 = scalar_lea.vmem %s1912_s14, 512  ;;  %p1914_p4 = scmp.lt.s32.totalorder %s2330_s0, %s1912_s14 }
  0xbd   : > { %p1909_p12 = pnand %p1907_p2, %p1863_p9  ;;  %p1915_p6 = scmp.lt.s32.totalorder %s1913_s28, %s1906_s2 }
  0xbf   : > { %p1910_p13 = pneg %p1909_p12  ;;  %p1916_p3 = por %p1915_p6, %p1914_p4 }
  0xc1   : > { %p1917_p5 = pnand %p1916_p3, %p1910_p13 }
  0xc3   : > { %1920 = shalt.err (!%p1917_p5)
}
  0xc4   : > { %s2013_s10 = smov 128   ;;  %s2014_s9 = smov 8  }
  0xc5   : > { %1641 = dma.hbm_to_vmem [thread:$0]  (!%p2285_p10), %s2326_s25, 256, %s2330_s0, %s2334_s6, %s2013_s10, %s2013_s10, %s2014_s9  }
  0xc6   : > { %p2595_p9 = scmp.ne.s32.totalorder %s2582_s21, 0 }
  0xc7   : > { %s2363_s24 = sand.u32 (!%p2595_p9), 1, %s1995_s30   ;;  %p2596_p8 = scmp.ne.s32.totalorder (!%p2595_p9), %s2579_s19, 0 }
  0xc8   : > { %503 = sbr.rel (%p2595_p9) target bundleno = 1952 (0x7a0), region = 76  ;;  %s1408_s20 = sshll.u32 (!%p2595_p9), %s2363_s24, 3 }
  0xc9   : > { %s506_s29 = scalar_lea.sflag (!%p2595_p9), [#allocation3], %s2363_s24  ;;  %s2367_s23 = scalar_lea.vmem (!%p2595_p9), [#allocation2], %s1408_s20 }
  0xcf   : > { %1966 = dma.done.wait (%p2596_p8), %s506_s29, 128  }
  0xd0   : > { %1968 = vsyncadd (%p2596_p8), %s506_s29, 4294967168  ;;  %s514_s0 = sand.u32 1, %s2116_s17   ;;  %s1409_s6 = sshll.u32 %s2363_s24, 4 }
  0xd1   : > { %s515_s21 = scalar_lea.sflag [#allocation6], %s514_s0  ;;  %s2377_s7 = scalar_lea.vmem [#allocation5], %s1409_s6 }
  0xd2   : > { %1970 = dma.done.wait (%p2596_p8), %s515_s21, 256  }
  0xd3   : > { %1972 = vsyncadd (%p2596_p8), %s515_s21, 4294967040  ;;  %p2597_p10 = scmp.eq.s32.totalorder %s2116_s17, 0 }
  0xd5   : > { %1974 = dma.done.wait (%p2597_p10), [#allocation6], 1024   ;;  %p2598_p7 = pmov %p2597_p10 }
  0xd7   : > { %1976 = vsyncadd (%p2598_p7), [#allocation6], 4294966272  ;;  %p2599_p11 = pmov %p2598_p7 }
  0xd8   : > { %p2600_p1 = pmov %p2598_p7 }
  0xd9   : > { %1978 = dma.done.wait (%p2599_p11), [#allocation9], 2048  }
  0xda   : > { %1980 = vsyncadd (%p2600_p1), [#allocation9], 4294965248  ;;  %p2601_p2 = pmov %p2600_p1 }
  0xdb   : > { %p2602_p12 = pmov %p2600_p1 }
  0xdc   : > { %1982 = dma.done.wait (%p2601_p2), [#allocation12], 1024  }
  0xdd   : > { %1984 = vsyncadd (%p2602_p12), [#allocation12], 4294966272  ;;  %v2015_v0 = vmov 0.0   ;;  %vm2016_vm0 = vmmov 0   ;;  %v1700_v1 = vld [vmem:[#allocation7] sm:$0xff]   ;;  %v1701_v2 = vld [vmem:[#allocation7 + $0x8] sm:$0xff]  }
  0xde   : > { %1508 = vmatprep.subr.bf16.mxu0 %v2015_v0  ;;  %1524 = vmatprep.mubr.msk.bf16.mxu0 %vm2016_vm0, %v2015_v0  ;;  %v1702_v3 = vld [vmem:[#allocation7 + $0x10] sm:$0xff]   ;;  %v1703_v4 = vld [vmem:[#allocation7 + $0x18] sm:$0xff]   ;;  %v1704_v5 = vld [vmem:[#allocation7 + $0x20] sm:$0xff]   ;;  %vm708_vm1 = vcmask 130048   ;;  %s2603_s28 = sld [smem:[#allocation25_spill]]  ;;  %s2604_s20 = sld [smem:[#allocation26_spill]] }
  0xdf   : > { %1528 = vmatprep.subr.bf16.mxu1 %v2015_v0  ;;  %1530 = vmatprep.mubr.msk.bf16.mxu1 %vm2016_vm0, %v2015_v0  ;;  %v1705_v6 = vld [vmem:[#allocation7 + $0x28] sm:$0xff]   ;;  %v1706_v7 = vld [vmem:[#allocation7 + $0x30] sm:$0xff]   ;;  %v1707_v8 = vld [vmem:[#allocation7 + $0x38] sm:$0xff]   ;;  %s2605_s0 = sld [smem:[#allocation27_spill]]  ;;  %s2606_s19 = sld [smem:[#allocation29_spill]] }
  0xe0   : > { %1509 = vmatpush3.bf16.msra.mxu0 %v1700_v1  ;;  %v2408_v9 = vld [vmem:[%s2377_s7] sm:$0xff]  ;;  %v2411_v10 = vld [vmem:[%s2377_s7 + $0x8] sm:$0xff]  ;;  %s2607_s26 = sld [smem:[#allocation30_spill]]  ;;  %s1467_s27 = sshll.u32 %s2116_s17, 8 }
  0xe1   : > { %1510 = vmatprep.subr.bf16.mxu0 %v2015_v0  ;;  %v589_v11 = vpack.c.bf16 %v2411_v10, %v2408_v9  ;;  %v2420_v17 = vld [vmem:[%s2367_s23] sm:$0xff]   ;;  %v1709_v27 = vld [vmem:[#allocation8] sm:$0xff]   ;;  %v1710_v28 = vld [vmem:[#allocation8 + $0x8] sm:$0xff]   ;;  %s583_s2 = scalar_lea.vmem [#allocation13], %s1409_s6  ;;  %s2608_s10 = sld [smem:[#allocation31_spill]] }
  0xe2   : > { %v1423_v18 = vld [vmem:[%s2548_s3] ss:$0 sm:$0xff]  ;;  %v1712_v30 = vld [vmem:[#allocation8 + $0x18] sm:$0xff]   ;;  %v1713_v31 = vld [vmem:[#allocation8 + $0x20] sm:$0xff]   ;;  %s1260_s8 = sshll.u32 %s583_s2, 4  ;;  %s1247_s17 = scalar_lea.sflag [#allocation4], %s2363_s24  ;;  %s2502_s8 = int_to_ptr.vmem [resolvable:$true] %s1260_s8 }
  0xe3   : > { %v1711_v29 = vld [vmem:[#allocation8 + $0x10] sm:$0xff]   ;;  %v1714_v32 = vld [vmem:[#allocation8 + $0x28] sm:$0xff]   ;;  %v1716_v34 = vld [vmem:[#allocation8 + $0x38] sm:$0xff]   ;;  %s2017_s6 = smov [#allocation13]  }
  0xe4   : > { %1511 = vmatpush3.bf16.msra.mxu0 %v1701_v2  ;;  %v1715_v33 = vld [vmem:[#allocation8 + $0x30] sm:$0xff]   ;;  %s1925_s29 = sshll.u32 %s2017_s6, 4  ;;  %s1926_s29 = int_to_ptr.vmem [resolvable:$false] %s1925_s29 }
  0xe5   : > { %1512 = vmatprep.subr.bf16.mxu0 %v2015_v0  ;;  %v1426_v51 = vld [vmem:[%s2549_s4] ss:$0 sm:$0xff]  ;;  %s1927_s23 = scalar_lea.vmem %s1926_s29, 512  ;;  %p1928_p3 = scmp.lt.s32.totalorder %s2502_s8, %s1926_s29 }
  0xe6   : > { %v1427_v56 = vld [vmem:[%s2550_s5] ss:$0 sm:$0xff] }
  0xe7   : > { %s2500_s9 = scalar_lea.hbm %s2608_s10, %s1467_s27 }
  0xe8   : > { %1513 = vmatpush3.bf16.msra.mxu0 %v1702_v3 }
  0xe9   : > { %1514 = vmatprep.subr.bf16.mxu0 %v2015_v0 }
  0xec   : > { %1515 = vmatpush3.bf16.msra.mxu0 %v1703_v4 }
  0xed   : > { %1516 = vmatprep.subr.bf16.mxu0 %v2015_v0 }
  0xf0   : > { %1517 = vmatpush3.bf16.msra.mxu0 %v1704_v5 }
  0xf1   : > { %1518 = vmatprep.subr.bf16.mxu0 %v2015_v0 }
  0xf4   : > { %1519 = vmatpush3.bf16.msra.mxu0 %v1705_v6  ;;  %v1436_v6 = vld [vmem:[%s2603_s28] ss:$0 sm:$0xff] }
  0xf5   : > { %1520 = vmatprep.subr.bf16.mxu0 %v2015_v0 }
  0xf8   : > { %1521 = vmatpush3.bf16.msra.mxu0 %v1706_v7 }
  0xf9   : > { %1522 = vmatprep.subr.bf16.mxu0 %v2015_v0 }
  0xfc   : > { %1523 = vmatpush3.bf16.msra.mxu0 %v1707_v8 }
  0xfd   : > { %1554 = vmatprep.subr.bf16.mxu0 %v2015_v0 }
  0xff   : > { %1525 = vmatmul.mubr.bf16.vlgmr.msra.gmra.mrb[0].mxu0 %v589_v11 }
 0x100   : > { %1556 = vmatprep.mubr.msk.bf16.mxu0 %vm2016_vm0, %v2015_v0 }
 0x1d2   : > { %v688_v12 = vpop.f32.mrb[0].mxu0 }
 0x1d3   : > { %v1526_v13 = vpop.f32.mrb[1].mxu0 }
 0x1d4   : > { %v691_v14 = vpop.f32.mrb[2].mxu0 }
 0x1d5   : > { %v695_v15 = vpack.c.bf16 %v691_v14, %v688_v12  ;;  %v1527_v16 = vpop.f32.mrb[3].mxu0 }
 0x1d7   : > { %1529 = vmatpush3.bf16.msra.mxu1 %v695_v15 }
 0x1d8   : > { %1534 = vmatprep.subr.bf16.mxu1 %v2015_v0 }
 0x1da   : > { %1531 = vmatmul.mubr.msk.bf16.vlgmr.msra.gmra.mrb[0].mxu1 %vm708_vm1, %v2420_v17 }
 0x1db   : > { %1550 = vmatprep.mubr.msk.bf16.mxu1 %vm2016_vm0, %v2015_v0  ;;  %1535 = vmatpush3.bf16.msra.mxu1 %v1709_v27  ;;  %v1727_v27 = vld [vmem:[#allocation11 + $0x10] sm:$0xff]  }
 0x1dc   : > { %1536 = vmatprep.subr.bf16.mxu1 %v2015_v0 }
 0x1df   : > { %1537 = vmatpush3.bf16.msra.mxu1 %v1710_v28  ;;  %v1728_v28 = vld [vmem:[#allocation11 + $0x18] sm:$0xff]  }
 0x1e0   : > { %1538 = vmatprep.subr.bf16.mxu1 %v2015_v0 }
 0x1e3   : > { %1539 = vmatpush3.bf16.msra.mxu1 %v1711_v29  ;;  %v1729_v29 = vld [vmem:[#allocation11 + $0x20] sm:$0xff]  }
 0x1e4   : > { %1540 = vmatprep.subr.bf16.mxu1 %v2015_v0 }
 0x1e7   : > { %1541 = vmatpush3.bf16.msra.mxu1 %v1712_v30  ;;  %v1730_v30 = vld [vmem:[#allocation11 + $0x28] sm:$0xff]  }
 0x1e8   : > { %1542 = vmatprep.subr.bf16.mxu1 %v2015_v0 }
 0x1eb   : > { %1543 = vmatpush3.bf16.msra.mxu1 %v1713_v31 }
 0x1ec   : > { %1544 = vmatprep.subr.bf16.mxu1 %v2015_v0 }
 0x1ef   : > { %1545 = vmatpush3.bf16.msra.mxu1 %v1714_v32 }
 0x1f0   : > { %1546 = vmatprep.subr.bf16.mxu1 %v2015_v0 }
 0x1f3   : > { %1547 = vmatpush3.bf16.msra.mxu1 %v1715_v33 }
 0x1f4   : > { %1548 = vmatprep.subr.bf16.mxu1 %v2015_v0 }
 0x1f7   : > { %1549 = vmatpush3.bf16.msra.mxu1 %v1716_v34 }
 0x1f8   : > { %1560 = vmatprep.subr.bf16.mxu1 %v2015_v0 }
 0x2ad   : > { %v746_v19 = vpop.f32.mrb[0].mxu1 }
 0x2ae   : > { %v747_v20 = vadd.f32 %v1423_v18, %v746_v19  ;;  %v1532_v21 = vpop.f32.mrb[1].mxu1  ;;  %v1719_v19 = vld [vmem:[#allocation10 + $0x10] sm:$0xff]  }
 0x2af   : > { %v749_v22 = vpop.f32.mrb[2].mxu1  ;;  %v1721_v21 = vld [vmem:[#allocation10 + $0x20] sm:$0xff]  }
 0x2b0   : > { %v750_v23 = vadd.f32 %v1423_v18, %v749_v22  ;;  %755 = vadd.xlane.f32.xlu0 %v747_v20  ;;  %v1533_v24 = vpop.f32.mrb[3].mxu1  ;;  %v761_v25 = vmul.f32 %v747_v20, %v747_v20  ;;  %v1718_v18 = vld [vmem:[#allocation10 + $0x8] sm:$0xff]  }
 0x2b1   : > { %v1722_v22 = vld [vmem:[#allocation10 + $0x28] sm:$0xff]   ;;  %v1724_v24 = vld [vmem:[#allocation10 + $0x38] sm:$0xff]  }
 0x2b2   : > { %763 = vadd.xlane.f32.xlu1 %v761_v25  ;;  %v762_v26 = vmul.f32 %v750_v23, %v750_v23  ;;  %v1725_v25 = vld [vmem:[#allocation11] sm:$0xff]  }
 0x2b4   : > { %757 = vadd.xlane.f32.xlu0 %v750_v23 }
 0x2b6   : > { %765 = vadd.xlane.f32.xlu1 %v762_v26  ;;  %v1726_v26 = vld [vmem:[#allocation11 + $0x8] sm:$0xff]  }
 0x33d   : > { %v756_v35 = vpop.xlane.xlu0 %755 }
 0x33e   : > { %v759_v36 = vmul.f32 0.03125, %v756_v35 }
 0x33f   : > { %v764_v37 = vpop.xlane.xlu1 %763 }
 0x340   : > { %v769_v38 = vmul.f32 %v759_v36, %v759_v36  ;;  %v767_v39 = vmul.f32 0.03125, %v764_v37  ;;  %v773_v49 = vsub.f32 %v747_v20, %v759_v36  ;;  %v1720_v20 = vld [vmem:[#allocation10 + $0x18] sm:$0xff]  }
 0x341   : > { %v758_v40 = vpop.xlane.xlu0 %757 }
 0x342   : > { %v771_v41 = vsub.f32 %v767_v39, %v769_v38  ;;  %v760_v42 = vmul.f32 0.03125, %v758_v40 }
 0x343   : > { %v766_v43 = vpop.xlane.xlu1 %765 }
 0x344   : > { %v775_v44 = vadd.f32 1e-05, %v771_v41  ;;  %v770_v45 = vmul.f32 %v760_v42, %v760_v42  ;;  %v768_v46 = vmul.f32 0.03125, %v766_v43  ;;  %v774_v53 = vsub.f32 %v750_v23, %v760_v42  ;;  %v1723_v23 = vld [vmem:[#allocation10 + $0x30] sm:$0xff]  }
 0x346   : > { %1733 = vrsqrt.f32 %v775_v44  ;;  %v772_v47 = vsub.f32 %v768_v46, %v770_v45 }
 0x348   : > { %v776_v48 = vadd.f32 1e-05, %v772_v47  ;;  %v1438_v47 = vld [vmem:[%s2604_s20] ss:$0 sm:$0xff]  ;;  %s1921_s20 = scalar_lea.vmem %s2502_s8, 256 }
 0x349   : > { %p1922_p13 = scmp.ne.s32.totalorder %s2502_s8, %s1921_s20  ;;  %p1929_p5 = scmp.lt.s32.totalorder %s1927_s23, %s1921_s20 }
 0x34a   : > { %1735 = vrsqrt.f32 %v776_v48 }
 0x34b   : > { %p1923_p4 = pnand %p1922_p13, %p2265_p0  ;;  %p1930_p9 = por %p1929_p5, %p1928_p3 }
 0x34d   : > { %p1924_p6 = pneg %p1923_p4 }
 0x34f   : > { %p1931_p8 = pnand %p1930_p9, %p1924_p6 }
 0x350   : > { %v1734_v50 = vpop.eup %1733 }
 0x351   : > { %v779_v52 = vmul.f32 %v1734_v50, %v773_v49 }
 0x353   : > { %v787_v54 = vmul.f32 %v1426_v51, %v779_v52 }
 0x354   : > { %v1736_v55 = vpop.eup %1735 }
 0x355   : > { %v780_v57 = vmul.f32 %v1736_v55, %v774_v53  ;;  %v795_v59 = vadd.f32 %v1427_v56, %v787_v54  ;;  %v1439_v53 = vld [vmem:[%s2605_s0] ss:$0 sm:$0xff] }
 0x357   : > { %v788_v58 = vmul.f32 %v1426_v51, %v780_v57  ;;  %v797_v61 = vmax.f32 %v795_v59, 0.0  ;;  %v1732_v59 = vld [vmem:[#allocation11 + $0x38] sm:$0xff]  }
 0x359   : > { %v796_v60 = vadd.f32 %v1427_v56, %v788_v58  ;;  %v1731_v58 = vld [vmem:[#allocation11 + $0x30] sm:$0xff]  }
 0x35b   : > { %v798_v62 = vmax.f32 %v796_v60, 0.0  ;;  %v1440_v60 = vld [vmem:[%s2606_s19] ss:$0 sm:$0xff] }
 0x35d   : > { %v799_v63 = vpack.c.bf16 %v798_v62, %v797_v61 }
 0x35f   : > { %1551 = vmatmul.mubr.bf16.vlgmr.msra.gmra.mrb[4].mxu1 %v799_v63 }
 0x360   : > { %1576 = vmatprep.mubr.msk.bf16.mxu1 %vm2016_vm0, %v2015_v0 }
 0x432   : > { %v898_v1 = vpop.f32.mrb[4].mxu1 }
 0x433   : > { %v1552_v2 = vpop.f32.mrb[5].mxu1 }
 0x434   : > { %v901_v3 = vpop.f32.mrb[6].mxu1 }
 0x435   : > { %v905_v4 = vpack.c.bf16 %v901_v3, %v898_v1  ;;  %v1553_v5 = vpop.f32.mrb[7].mxu1 }
 0x437   : > { %1555 = vmatpush3.bf16.msra.mxu0 %v905_v4 }
 0x438   : > { %1580 = vmatprep.subr.bf16.mxu0 %v2015_v0 }
 0x43a   : > { %1557 = vmatmul.mubr.msk.bf16.vlgmr.msra.gmra.mrb[4].mxu0 %vm708_vm1, %v2420_v17  ;;  %v1717_v17 = vld [vmem:[#allocation10] sm:$0xff]  }
 0x43b   : > { %1596 = vmatprep.mubr.msk.bf16.mxu0 %vm2016_vm0, %v2015_v0  ;;  %1561 = vmatpush3.bf16.msra.mxu1 %v1717_v17 }
 0x43c   : > { %1562 = vmatprep.subr.bf16.mxu1 %v2015_v0  ;;  %1581 = vmatpush3.bf16.msra.mxu0 %v1725_v25 }
 0x43d   : > { %1582 = vmatprep.subr.bf16.mxu0 %v2015_v0 }
 0x43f   : > { %1563 = vmatpush3.bf16.msra.mxu1 %v1718_v18 }
 0x440   : > { %1564 = vmatprep.subr.bf16.mxu1 %v2015_v0  ;;  %1583 = vmatpush3.bf16.msra.mxu0 %v1726_v26 }
 0x441   : > { %1584 = vmatprep.subr.bf16.mxu0 %v2015_v0 }
 0x443   : > { %1565 = vmatpush3.bf16.msra.mxu1 %v1719_v19 }
 0x444   : > { %1566 = vmatprep.subr.bf16.mxu1 %v2015_v0  ;;  %1585 = vmatpush3.bf16.msra.mxu0 %v1727_v27 }
 0x445   : > { %1586 = vmatprep.subr.bf16.mxu0 %v2015_v0 }
 0x447   : > { %1567 = vmatpush3.bf16.msra.mxu1 %v1720_v20 }
 0x448   : > { %1568 = vmatprep.subr.bf16.mxu1 %v2015_v0  ;;  %1587 = vmatpush3.bf16.msra.mxu0 %v1728_v28 }
 0x449   : > { %1588 = vmatprep.subr.bf16.mxu0 %v2015_v0 }
 0x44b   : > { %1569 = vmatpush3.bf16.msra.mxu1 %v1721_v21 }
 0x44c   : > { %1570 = vmatprep.subr.bf16.mxu1 %v2015_v0  ;;  %1589 = vmatpush3.bf16.msra.mxu0 %v1729_v29 }
 0x44d   : > { %1590 = vmatprep.subr.bf16.mxu0 %v2015_v0 }
 0x44f   : > { %1571 = vmatpush3.bf16.msra.mxu1 %v1722_v22 }
 0x450   : > { %1572 = vmatprep.subr.bf16.mxu1 %v2015_v0  ;;  %1591 = vmatpush3.bf16.msra.mxu0 %v1730_v30 }
 0x451   : > { %1592 = vmatprep.subr.bf16.mxu0 %v2015_v0 }
 0x453   : > { %1573 = vmatpush3.bf16.msra.mxu1 %v1723_v23 }
 0x454   : > { %1574 = vmatprep.subr.bf16.mxu1 %v2015_v0  ;;  %1593 = vmatpush3.bf16.msra.mxu0 %v1731_v58 }
 0x455   : > { %1594 = vmatprep.subr.bf16.mxu0 %v2015_v0  ;;  %v1449_v0 = vld [vmem:[%s2607_s26] ss:$0 sm:$0xff] }
 0x457   : > { %1575 = vmatpush3.bf16.msra.mxu1 %v1724_v24 }
 0x458   : > { %1595 = vmatpush3.bf16.msra.mxu0 %v1732_v59 }
 0x50d   : > { %v947_v7 = vpop.f32.mrb[4].mxu0 }
 0x50e   : > { %v2454_v8 = vadd.f32 %v1436_v6, %v947_v7  ;;  %v1558_v11 = vpop.f32.mrb[5].mxu0 }
 0x50f   : > { %v950_v12 = vpop.f32.mrb[6].mxu0 }
 0x510   : > { %v2456_v13 = vadd.f32 %v1436_v6, %v950_v12  ;;  %956 = vadd.xlane.f32.xlu0 %v2454_v8  ;;  %v1559_v14 = vpop.f32.mrb[7].mxu0  ;;  %v962_v15 = vmul.f32 %v2454_v8, %v2454_v8 }
 0x512   : > { %958 = vadd.xlane.f32.xlu1 %v2456_v13  ;;  %v963_v16 = vmul.f32 %v2456_v13, %v2456_v13 }
 0x514   : > { %964 = vadd.xlane.f32.xlu0 %v962_v15 }
 0x516   : > { %966 = vadd.xlane.f32.xlu1 %v963_v16 }
 0x59d   : > { %v957_v31 = vpop.xlane.xlu0 %956 }
 0x59e   : > { %v960_v32 = vmul.f32 0.03125, %v957_v31 }
 0x59f   : > { %v959_v33 = vpop.xlane.xlu1 %958 }
 0x5a0   : > { %v961_v34 = vmul.f32 0.03125, %v959_v33  ;;  %v970_v36 = vmul.f32 %v960_v32, %v960_v32  ;;  %v974_v45 = vsub.f32 %v2454_v8, %v960_v32 }
 0x5a1   : > { %v965_v35 = vpop.xlane.xlu0 %964 }
 0x5a2   : > { %v968_v37 = vmul.f32 0.03125, %v965_v35  ;;  %v971_v39 = vmul.f32 %v961_v34, %v961_v34  ;;  %v975_v48 = vsub.f32 %v2456_v13, %v961_v34 }
 0x5a3   : > { %v967_v38 = vpop.xlane.xlu1 %966 }
 0x5a4   : > { %v972_v40 = vsub.f32 %v968_v37, %v970_v36  ;;  %v969_v41 = vmul.f32 0.03125, %v967_v38 }
 0x5a6   : > { %v976_v42 = vadd.f32 1e-05, %v972_v40  ;;  %v973_v43 = vsub.f32 %v969_v41, %v971_v39 }
 0x5a8   : > { %1737 = vrsqrt.f32 %v976_v42  ;;  %v977_v44 = vadd.f32 1e-05, %v973_v43 }
 0x5aa   : > { %1739 = vrsqrt.f32 %v977_v44 }
 0x5b2   : > { %v1738_v46 = vpop.eup %1737 }
 0x5b3   : > { %v980_v49 = vmul.f32 %v1738_v46, %v974_v45 }
 0x5b4   : > { %v1740_v50 = vpop.eup %1739 }
 0x5b5   : > { %v981_v51 = vmul.f32 %v1740_v50, %v975_v48  ;;  %v988_v52 = vmul.f32 %v1438_v47, %v980_v49 }
 0x5b7   : > { %v989_v54 = vmul.f32 %v1438_v47, %v981_v51  ;;  %v996_v55 = vadd.f32 %v1439_v53, %v988_v52 }
 0x5b9   : > { %v997_v56 = vadd.f32 %v1439_v53, %v989_v54 }
 0x5bb   : > { %v998_v57 = vpack.c.bf16 %v997_v56, %v996_v55 }
 0x5bd   : > { %1577 = vmatmul.mubr.bf16.vlgmr.msra.gmra.mrb[8].mxu1 %v998_v57 }
 0x690   : > { %v1104_v61 = vpop.f32.mrb[8].mxu1 }
 0x691   : > { %v1105_v62 = vadd.f32 %v1440_v60, %v1104_v61  ;;  %v1578_v63 = vpop.f32.mrb[9].mxu1 }
 0x692   : > { %v1107_v1 = vpop.f32.mrb[10].mxu1 }
 0x693   : > { %v1108_v2 = vadd.f32 %v1440_v60, %v1107_v1  ;;  %v1579_v3 = vpop.f32.mrb[11].mxu1  ;;  %v1111_v4 = vmax.f32 %v1105_v62, 0.0 }
 0x695   : > { %v1112_v5 = vmax.f32 %v1108_v2, 0.0 }
 0x697   : > { %v1113_v6 = vpack.c.bf16 %v1112_v5, %v1111_v4 }
 0x699   : > { %1597 = vmatmul.mubr.bf16.vlgmr.msra.gmra.mrb[8].mxu0 %v1113_v6 }
 0x76c   : > { %v1219_v7 = vpop.f32.mrb[8].mxu0 }
 0x76d   : > { %v1220_v8 = vadd.f32 %v1449_v0, %v1219_v7  ;;  %v1598_v11 = vpop.f32.mrb[9].mxu0 }
 0x76e   : > { %v1222_v12 = vpop.f32.mrb[10].mxu0 }
 0x76f   : > { %v1458_v13 = vmul.f32 -1.442695, %v1220_v8  ;;  %v1223_v14 = vadd.f32 %v1449_v0, %v1222_v12  ;;  %v1599_v15 = vpop.f32.mrb[11].mxu0 }
 0x771   : > { %1741 = vpow2.f32 %v1458_v13  ;;  %v1459_v16 = vmul.f32 -1.442695, %v1223_v14 }
 0x773   : > { %1743 = vpow2.f32 %v1459_v16 }
 0x77b   : > { %v1742_v17 = vpop.eup %1741 }
 0x77c   : > { %v1232_v18 = vadd.f32 1.0, %v1742_v17 }
 0x77d   : > { %v1744_v19 = vpop.eup %1743 }
 0x77e   : > { %1745 = vrcp.f32 %v1232_v18  ;;  %v1233_v20 = vadd.f32 1.0, %v1744_v19 }
 0x780   : > { %1747 = vrcp.f32 %v1233_v20 }
 0x788   : > { %v1746_v21 = vpop.eup %1745 }
 0x789   : > { %v1238_v22 = vmul.f32 %v1746_v21, %v996_v55 }
 0x78a   : > { %v1748_v23 = vpop.eup %1747 }
 0x78b   : > { %v1240_v24 = vadd.f32 %v1238_v22, %v2408_v9  ;;  %v1239_v25 = vmul.f32 %v1748_v23, %v997_v56 }
 0x78d   : > { %v1242_v26 = vmax.f32 %v1240_v24, 0.0  ;;  %v1241_v27 = vadd.f32 %v1239_v25, %v2411_v10 }
 0x78f   : > { %v1243_v28 = vmax.f32 %v1241_v27, 0.0  ;;  %1244 = vst [vmem:[%s583_s2] sm:$0xff] %v1242_v26 }
 0x791   : > { %1245 = vst [vmem:[%s583_s2 + $0x8] sm:$0xff] %v1243_v28 }
 0x792   : > { %1934 = shalt.err (!%p1931_p8)
}
 0x793   : > { %s1935_s0 = scalar_lea.hbm %s2500_s9, 256  ;;  %s1939_s19 = scalar_lea.hbm %s2608_s10, 1024 }
 0x794   : > { %p1936_p10 = scmp.ne.s32.totalorder %s2500_s9, %s1935_s0  ;;  %p1940_p1 = scmp.lt.u32.totalorder %s2500_s9, %s2608_s10 }
 0x795   : > { %p1941_p2 = scmp.lt.u32.totalorder %s1939_s19, %s1935_s0  ;;  %p1943_p13 = scmp.lt.u32.totalorder %s1935_s0, %s2500_s9 }
 0x796   : > { %p1937_p7 = pnand %p1936_p10, %p2265_p0 }
 0x797   : > { %p1942_p12 = por %p1941_p2, %p1940_p1 }
 0x798   : > { %p1938_p11 = pneg %p1937_p7 }
 0x799   : > { %p1944_p4 = por %p1943_p13, %p1942_p12 }
 0x79b   : > { %p1945_p6 = pnand %p1944_p4, %p1938_p11 }
 0x79d   : > { %1948 = shalt.err (!%p1945_p6)
}
 0x79e   : > { %s2018_s26 = smov 128   ;;  %s2019_s27 = smov 8  }
 0x79f   : > { %1620 = dma.vmem_to_hbm [thread:$0]  (%p2265_p0), %s2502_s8, 256, %s2500_s9, %s1247_s17, %s2018_s26, %s2018_s26, %s2019_s27  }
 0x7a0 PF: > { %s2609_s2 = sld [smem:[#allocation20_spill]]  ;;  %s2610_s14 = sld [smem:[#allocation21_spill]] }
 0x7a1   : > { %p1655_p3 = scmp.ge.s32.totalorder %s2003_s16, 2 }
 0x7a6   : > { %s1275_s28 = sand.u32 1, %s2609_s2   ;;  %p2611_p5 = scmp.ne.s32.totalorder %s2610_s14, 0 }
 0x7a7   : > { %s1276_s20 = scalar_lea.sflag [#allocation4], %s1275_s28 }
 0x7a8   : > { %p1643_p9 = pnand %p1655_p3, %p2611_p5 }
 0x7aa   : > { %1986 = dma.done.wait (!%p1643_p9), %s1276_s20, 256  }
 0x7ab   : > { %1988 = vsyncadd (!%p1643_p9), %s1276_s20, 4294967040  ;;  %p32_p8 = scmp.ge.s32.totalorder %s2255_s13, 6   ;;  %s2612_s29 = smov %s1995_s30 }
 0x7ac   : > { %s2613_s30 = smov %s1999_s15  ;;  %s2614_s15 = smov %s2271_s18 }
 0x7ad   : > { %s2615_s16 = smov %s2255_s13  ;;  %34 = sbr.rel (!%p32_p8) target bundleno = 20 (0x14), region = 150 }
 0x7b4   :  { %1281 = vsyncpa [#allocation3], 1 }
 0x7b5   :  { %1283 = vsyncpa [#allocation3 + $0x1], 1 }
 0x7b6   :  { %1284 = vsyncpa [#allocation6], 1 }
 0x7b7   :  { %1286 = vsyncpa [#allocation6 + $0x1], 1 }
 0x7b8   :  { %1287 = vsyncpa [#allocation9], 1 }
 0x7b9   :  { %1288 = vsyncpa [#allocation12], 1 }
 0x7ba   :  { %1289 = vsyncpa [#allocation4], 1 }
 0x7bb   :  { %1291 = vsyncpa [#allocation4 + $0x1], 1 }

</bundles_post_ra>
